<compile_context>
chip_gen: v6e
topology: v6e:2x2x1
jax: 0.10.0
libtpu: 0.0.40
codegen_flags: <defaults>
</compile_context>

<pallas_src>
import jax
import jax.numpy as jnp
from jax.experimental import pallas as pl
from jax.experimental.pallas import tpu as pltpu


# Original layer dims and their lane-padded (multiple-of-128) counterparts.
_DIMS = [(512, 256), (256, 256), (256, 150), (150, 150), (150, 100)]
_PAD = {512: 512, 256: 256, 150: 256, 100: 128}
_IN_DIM = 512
_OUT_DIM = 100
_OUT_PAD = _PAD[_OUT_DIM]


def _round_up(x, m):
    return ((x + m - 1) // m) * m


def _leaky_relu_f32(x, slope=0.2):
    return jnp.where(x > 0, x, slope * x)


def _mlp_kernel(x_ref,
                w1_ref, b1_ref,
                w2_ref, b2_ref,
                w3_ref, b3_ref,
                w4_ref, b4_ref,
                w5_ref, b5_ref,
                o_ref):
    """One batch tile through the whole 5-layer MLP.

    x_ref: (TILE_B, 512) bf16; weights bf16 (lane-padded); biases f32 (1, N).
    MXU accumulation in f32; activations in f32 on the VPU/EUP; hidden
    activations re-cast to bf16 between layers for MXU throughput.
    """
    h = x_ref[...]  # bf16

    layers = ((w1_ref, b1_ref), (w2_ref, b2_ref), (w3_ref, b3_ref),
              (w4_ref, b4_ref), (w5_ref, b5_ref))
    n = len(layers)
    for idx, (w_ref, b_ref) in enumerate(layers):
        acc = jnp.dot(h, w_ref[...], preferred_element_type=jnp.float32)
        acc = acc + b_ref[...]  # f32 bias broadcast over the batch tile
        if idx < n - 1:
            h = _leaky_relu_f32(acc).astype(jnp.bfloat16)
        else:
            o_ref[...] = jnp.tanh(acc).astype(o_ref.dtype)


def pad_params(params):
    """Zero-pad weights/biases to lane-friendly shapes; weights -> bf16.

    Padded weight rows (padded input features) and columns (padded output
    features) are exactly zero, so real output columns match the unpadded
    computation (modulo f32 accumulation of extra zeros, which is exact).
    """
    flat = []
    for (w, b), (fi, fo) in zip(params, _DIMS):
        fi_p, fo_p = _PAD[fi], _PAD[fo]
        w_p = jnp.zeros((fi_p, fo_p), jnp.bfloat16)
        w_p = w_p.at[:fi, :fo].set(w.astype(jnp.bfloat16))
        b_p = jnp.zeros((1, fo_p), jnp.float32)
        b_p = b_p.at[:, :fo].set(b.reshape(1, fo).astype(jnp.float32))
        flat.extend([w_p, b_p])
    return flat


def clip_text_embedding_transformer(text_embeddings, params, *, tile_b=512):
    """Forward pass. text_embeddings: (B, 512) float. Returns (B, 100) float32."""
    B, F = text_embeddings.shape
    assert F == _IN_DIM, F
    assert tile_b % 8 == 0, "tile_b must be a multiple of 8 (sublane)"

    flat_params = pad_params(params)

    # Adaptive batch tiling: tiny batches use a single sublane-aligned tile;
    # large batches use the requested tile, with the batch padded to fit.
    b_min = _round_up(B, 8)
    if b_min <= tile_b:
        tile_b_eff = b_min
        b_pad = b_min
    else:
        tile_b_eff = tile_b
        b_pad = _round_up(B, tile_b)

    x = text_embeddings.astype(jnp.bfloat16)
    if b_pad != B:
        x = jnp.pad(x, ((0, b_pad - B), (0, 0)))

    grid = (b_pad // tile_b_eff,)

    # Activations tiled over the batch; weights/biases resident (constant index).
    const_map = lambda i: (0, 0)
    in_specs = [pl.BlockSpec((tile_b_eff, _IN_DIM), lambda i: (i, 0))]
    in_specs += [pl.BlockSpec(p.shape, const_map) for p in flat_params]
    out_specs = pl.BlockSpec((tile_b_eff, _OUT_PAD), lambda i: (i, 0))

    flops = 2 * b_pad * sum(fi * fo for fi, fo in _DIMS)
    bytes_accessed = int(
        x.size * x.dtype.itemsize
        + b_pad * _OUT_PAD * 4
        + sum(int(p.size) * p.dtype.itemsize for p in flat_params))
    cost = pl.CostEstimate(flops=flops,
                           transcendentals=b_pad * _OUT_PAD,
                           bytes_accessed=bytes_accessed)

    out_padded = pl.pallas_call(
        _mlp_kernel,
        out_shape=jax.ShapeDtypeStruct((b_pad, _OUT_PAD), jnp.float32),
        grid=grid,
        in_specs=in_specs,
        out_specs=out_specs,
        compiler_params=pltpu.CompilerParams(
            dimension_semantics=("parallel",),   # shards batch across TCs on v7x
            vmem_limit_bytes=32 * 1024 * 1024),
        cost_estimate=cost,
    )(x, *flat_params)

    return out_padded[:B, :_OUT_DIM]


def init_params(key):
    """Deterministic init (PyTorch Linear default: U(-1/sqrt(in), 1/sqrt(in)))."""
    params = []
    for (fan_in, fan_out) in _DIMS:
        key, kw, kb = jax.random.split(key, 3)
        bound = 1.0 / jnp.sqrt(jnp.float32(fan_in))
        w = jax.random.uniform(kw, (fan_in, fan_out), jnp.float32, -bound, bound)
        b = jax.random.uniform(kb, (1, fan_out), jnp.float32, -bound, bound)
        params.append((w, b))
    return params


def _reference(x, params):
    """Pure-JAX reference mirroring the kernel's bf16-matmul / f32-activation math."""
    h = x.astype(jnp.float32)
    for i, (w, b) in enumerate(params):
        acc = jnp.dot(h.astype(jnp.bfloat16), w.astype(jnp.bfloat16),
                      preferred_element_type=jnp.float32)
        acc = acc + b.reshape(1, -1).astype(jnp.float32)
        if i < len(params) - 1:
            h = jnp.where(acc > 0, acc, 0.2 * acc)
        else:
            h = jnp.tanh(acc)
    return h


if __name__ == "__main__":
    key = jax.random.PRNGKey(0)
    key, kx = jax.random.split(key)

    B = 8  # small batch of CLIP text embeddings for the demo
    text_embeddings = jax.random.normal(kx, (B, 512), jnp.float32)

    params = init_params(key)

    out = clip_text_embedding_transformer(text_embeddings, params)
    out = jax.block_until_ready(out)

    ref = _reference(text_embeddings, params)
    assert out.shape == (B, 100), out.shape
    # bf16 matmuls: compare against the matching bf16 reference; differences
    # come only from f32 accumulation order on the MXU.
    assert jnp.allclose(out, ref, atol=2e-2, rtol=0.0), \
        f"mismatch vs reference, max abs err {float(jnp.max(jnp.abs(out - ref)))}"
    assert bool(jnp.all(jnp.isfinite(out)))

    print("KERNEL_OK")
</pallas_src>

<mosaic_0001>
module attributes {stable_mosaic.version = 11 : i64} {
  func.func @_mlp_kernel(%arg0: i32, %arg1: memref<8x512xbf16, #tpu.memory_space<vmem>>, %arg2: memref<512x256xbf16, #tpu.memory_space<vmem>>, %arg3: memref<1x256xf32, #tpu.memory_space<vmem>>, %arg4: memref<256x256xbf16, #tpu.memory_space<vmem>>, %arg5: memref<1x256xf32, #tpu.memory_space<vmem>>, %arg6: memref<256x256xbf16, #tpu.memory_space<vmem>>, %arg7: memref<1x256xf32, #tpu.memory_space<vmem>>, %arg8: memref<256x256xbf16, #tpu.memory_space<vmem>>, %arg9: memref<1x256xf32, #tpu.memory_space<vmem>>, %arg10: memref<256x128xbf16, #tpu.memory_space<vmem>>, %arg11: memref<1x128xf32, #tpu.memory_space<vmem>>, %arg12: memref<8x128xf32, #tpu.memory_space<vmem>>) attributes {dimension_semantics = [#tpu.dimension_semantics<parallel>], iteration_bounds = array<i64: 1>, scalar_prefetch = 0 : i64, scratch_operands = 0 : i64, tpu.core_type = #tpu.core_type<tc>, window_params = [{transform_indices = @transform_0, window_bounds = array<i64: 8, 512>}, {pipeline_mode = #tpu.pipeline_mode<synchronous>, transform_indices = @transform_1, window_bounds = array<i64: 512, 256>}, {pipeline_mode = #tpu.pipeline_mode<synchronous>, transform_indices = @transform_2, window_bounds = array<i64: 1, 256>}, {pipeline_mode = #tpu.pipeline_mode<synchronous>, transform_indices = @transform_3, window_bounds = array<i64: 256, 256>}, {pipeline_mode = #tpu.pipeline_mode<synchronous>, transform_indices = @transform_4, window_bounds = array<i64: 1, 256>}, {pipeline_mode = #tpu.pipeline_mode<synchronous>, transform_indices = @transform_5, window_bounds = array<i64: 256, 256>}, {pipeline_mode = #tpu.pipeline_mode<synchronous>, transform_indices = @transform_6, window_bounds = array<i64: 1, 256>}, {pipeline_mode = #tpu.pipeline_mode<synchronous>, transform_indices = @transform_7, window_bounds = array<i64: 256, 256>}, {pipeline_mode = #tpu.pipeline_mode<synchronous>, transform_indices = @transform_8, window_bounds = array<i64: 1, 256>}, {pipeline_mode = #tpu.pipeline_mode<synchronous>, transform_indices = @transform_9, window_bounds = array<i64: 256, 128>}, {pipeline_mode = #tpu.pipeline_mode<synchronous>, transform_indices = @transform_10, window_bounds = array<i64: 1, 128>}, {transform_indices = @transform_11, window_bounds = array<i64: 8, 128>}]} {
    %c0 = arith.constant 0 : index
    %c0_0 = arith.constant 0 : index
    %0 = vector.load %arg1[%c0, %c0_0] : memref<8x512xbf16, #tpu.memory_space<vmem>>, vector<8x512xbf16>
    %c0_1 = arith.constant 0 : index
    %c0_2 = arith.constant 0 : index
    %1 = vector.load %arg2[%c0_1, %c0_2] : memref<512x256xbf16, #tpu.memory_space<vmem>>, vector<512x256xbf16>
    %cst = arith.constant dense<0.000000e+00> : vector<8x256xf32>
    %2 = tpu.matmul %0, %1, %cst {dimension_numbers = #tpu.dot_dimension_numbers<[1], [0], [0], [1], [0, 0, 1, 1], [], []>} : vector<8x512xbf16>, vector<512x256xbf16>, vector<8x256xf32> -> vector<8x256xf32>
    %c0_3 = arith.constant 0 : index
    %c0_4 = arith.constant 0 : index
    %3 = vector.load %arg3[%c0_3, %c0_4] : memref<1x256xf32, #tpu.memory_space<vmem>>, vector<1x256xf32>
    %4 = vector.broadcast %3 : vector<1x256xf32> to vector<8x256xf32>
    %5 = arith.addf %2, %4 : vector<8x256xf32>
    %cst_5 = arith.constant 0.000000e+00 : f32
    %6 = vector.broadcast %cst_5 : f32 to vector<8x256xf32>
    %7 = arith.cmpf ogt, %5, %6 : vector<8x256xf32>
    %cst_6 = arith.constant 2.000000e-01 : f32
    %8 = vector.broadcast %cst_6 : f32 to vector<8x256xf32>
    %9 = arith.mulf %8, %5 : vector<8x256xf32>
    %10 = arith.select %7, %5, %9 : vector<8x256xi1>, vector<8x256xf32>
    %11 = arith.truncf %10 : vector<8x256xf32> to vector<8x256xbf16>
    %c0_7 = arith.constant 0 : index
    %c0_8 = arith.constant 0 : index
    %12 = vector.load %arg4[%c0_7, %c0_8] : memref<256x256xbf16, #tpu.memory_space<vmem>>, vector<256x256xbf16>
    %cst_9 = arith.constant dense<0.000000e+00> : vector<8x256xf32>
    %13 = tpu.matmul %11, %12, %cst_9 {dimension_numbers = #tpu.dot_dimension_numbers<[1], [0], [0], [1], [0, 0, 1, 1], [], []>} : vector<8x256xbf16>, vector<256x256xbf16>, vector<8x256xf32> -> vector<8x256xf32>
    %c0_10 = arith.constant 0 : index
    %c0_11 = arith.constant 0 : index
    %14 = vector.load %arg5[%c0_10, %c0_11] : memref<1x256xf32, #tpu.memory_space<vmem>>, vector<1x256xf32>
    %15 = vector.broadcast %14 : vector<1x256xf32> to vector<8x256xf32>
    %16 = arith.addf %13, %15 : vector<8x256xf32>
    %cst_12 = arith.constant 0.000000e+00 : f32
    %17 = vector.broadcast %cst_12 : f32 to vector<8x256xf32>
    %18 = arith.cmpf ogt, %16, %17 : vector<8x256xf32>
    %cst_13 = arith.constant 2.000000e-01 : f32
    %19 = vector.broadcast %cst_13 : f32 to vector<8x256xf32>
    %20 = arith.mulf %19, %16 : vector<8x256xf32>
    %21 = arith.select %18, %16, %20 : vector<8x256xi1>, vector<8x256xf32>
    %22 = arith.truncf %21 : vector<8x256xf32> to vector<8x256xbf16>
    %c0_14 = arith.constant 0 : index
    %c0_15 = arith.constant 0 : index
    %23 = vector.load %arg6[%c0_14, %c0_15] : memref<256x256xbf16, #tpu.memory_space<vmem>>, vector<256x256xbf16>
    %cst_16 = arith.constant dense<0.000000e+00> : vector<8x256xf32>
    %24 = tpu.matmul %22, %23, %cst_16 {dimension_numbers = #tpu.dot_dimension_numbers<[1], [0], [0], [1], [0, 0, 1, 1], [], []>} : vector<8x256xbf16>, vector<256x256xbf16>, vector<8x256xf32> -> vector<8x256xf32>
    %c0_17 = arith.constant 0 : index
    %c0_18 = arith.constant 0 : index
    %25 = vector.load %arg7[%c0_17, %c0_18] : memref<1x256xf32, #tpu.memory_space<vmem>>, vector<1x256xf32>
    %26 = vector.broadcast %25 : vector<1x256xf32> to vector<8x256xf32>
    %27 = arith.addf %24, %26 : vector<8x256xf32>
    %cst_19 = arith.constant 0.000000e+00 : f32
    %28 = vector.broadcast %cst_19 : f32 to vector<8x256xf32>
    %29 = arith.cmpf ogt, %27, %28 : vector<8x256xf32>
    %cst_20 = arith.constant 2.000000e-01 : f32
    %30 = vector.broadcast %cst_20 : f32 to vector<8x256xf32>
    %31 = arith.mulf %30, %27 : vector<8x256xf32>
    %32 = arith.select %29, %27, %31 : vector<8x256xi1>, vector<8x256xf32>
    %33 = arith.truncf %32 : vector<8x256xf32> to vector<8x256xbf16>
    %c0_21 = arith.constant 0 : index
    %c0_22 = arith.constant 0 : index
    %34 = vector.load %arg8[%c0_21, %c0_22] : memref<256x256xbf16, #tpu.memory_space<vmem>>, vector<256x256xbf16>
    %cst_23 = arith.constant dense<0.000000e+00> : vector<8x256xf32>
    %35 = tpu.matmul %33, %34, %cst_23 {dimension_numbers = #tpu.dot_dimension_numbers<[1], [0], [0], [1], [0, 0, 1, 1], [], []>} : vector<8x256xbf16>, vector<256x256xbf16>, vector<8x256xf32> -> vector<8x256xf32>
    %c0_24 = arith.constant 0 : index
    %c0_25 = arith.constant 0 : index
    %36 = vector.load %arg9[%c0_24, %c0_25] : memref<1x256xf32, #tpu.memory_space<vmem>>, vector<1x256xf32>
    %37 = vector.broadcast %36 : vector<1x256xf32> to vector<8x256xf32>
    %38 = arith.addf %35, %37 : vector<8x256xf32>
    %cst_26 = arith.constant 0.000000e+00 : f32
    %39 = vector.broadcast %cst_26 : f32 to vector<8x256xf32>
    %40 = arith.cmpf ogt, %38, %39 : vector<8x256xf32>
    %cst_27 = arith.constant 2.000000e-01 : f32
    %41 = vector.broadcast %cst_27 : f32 to vector<8x256xf32>
    %42 = arith.mulf %41, %38 : vector<8x256xf32>
    %43 = arith.select %40, %38, %42 : vector<8x256xi1>, vector<8x256xf32>
    %44 = arith.truncf %43 : vector<8x256xf32> to vector<8x256xbf16>
    %c0_28 = arith.constant 0 : index
    %c0_29 = arith.constant 0 : index
    %45 = vector.load %arg10[%c0_28, %c0_29] : memref<256x128xbf16, #tpu.memory_space<vmem>>, vector<256x128xbf16>
    %cst_30 = arith.constant dense<0.000000e+00> : vector<8x128xf32>
    %46 = tpu.matmul %44, %45, %cst_30 {dimension_numbers = #tpu.dot_dimension_numbers<[1], [0], [0], [1], [0, 0, 1, 1], [], []>} : vector<8x256xbf16>, vector<256x128xbf16>, vector<8x128xf32> -> vector<8x128xf32>
    %c0_31 = arith.constant 0 : index
    %c0_32 = arith.constant 0 : index
    %47 = vector.load %arg11[%c0_31, %c0_32] : memref<1x128xf32, #tpu.memory_space<vmem>>, vector<1x128xf32>
    %48 = vector.broadcast %47 : vector<1x128xf32> to vector<8x128xf32>
    %49 = arith.addf %46, %48 : vector<8x128xf32>
    %50 = math.tanh %49 : vector<8x128xf32>
    %c0_33 = arith.constant 0 : index
    %c0_34 = arith.constant 0 : index
    %51 = vector.load %arg12[%c0_33, %c0_34] : memref<8x128xf32, #tpu.memory_space<vmem>>, vector<8x128xf32>
    tpu.vector_store %arg12[%c0_33, %c0_34], %50 {strides = array<i32>} : memref<8x128xf32, #tpu.memory_space<vmem>>, vector<8x128xf32>,
    return
  }
  func.func @transform_0(%arg0: i32) -> (i32, i32) {
    %c0_i32 = arith.constant 0 : i32
    %c0_i32_0 = arith.constant 0 : i32
    return %arg0, %c0_i32 : i32, i32
  }
  func.func @transform_1(%arg0: i32) -> (i32, i32) {
    %c0_i32 = arith.constant 0 : i32
    %c0_i32_0 = arith.constant 0 : i32
    %c0_i32_1 = arith.constant 0 : i32
    return %c0_i32, %c0_i32_0 : i32, i32
  }
  func.func @transform_2(%arg0: i32) -> (i32, i32) {
    %c0_i32 = arith.constant 0 : i32
    %c0_i32_0 = arith.constant 0 : i32
    %c0_i32_1 = arith.constant 0 : i32
    return %c0_i32, %c0_i32_0 : i32, i32
  }
  func.func @transform_3(%arg0: i32) -> (i32, i32) {
    %c0_i32 = arith.constant 0 : i32
    %c0_i32_0 = arith.constant 0 : i32
    %c0_i32_1 = arith.constant 0 : i32
    return %c0_i32, %c0_i32_0 : i32, i32
  }
  func.func @transform_4(%arg0: i32) -> (i32, i32) {
    %c0_i32 = arith.constant 0 : i32
    %c0_i32_0 = arith.constant 0 : i32
    %c0_i32_1 = arith.constant 0 : i32
    return %c0_i32, %c0_i32_0 : i32, i32
  }
  func.func @transform_5(%arg0: i32) -> (i32, i32) {
    %c0_i32 = arith.constant 0 : i32
    %c0_i32_0 = arith.constant 0 : i32
    %c0_i32_1 = arith.constant 0 : i32
    return %c0_i32, %c0_i32_0 : i32, i32
  }
  func.func @transform_6(%arg0: i32) -> (i32, i32) {
    %c0_i32 = arith.constant 0 : i32
    %c0_i32_0 = arith.constant 0 : i32
    %c0_i32_1 = arith.constant 0 : i32
    return %c0_i32, %c0_i32_0 : i32, i32
  }
  func.func @transform_7(%arg0: i32) -> (i32, i32) {
    %c0_i32 = arith.constant 0 : i32
    %c0_i32_0 = arith.constant 0 : i32
    %c0_i32_1 = arith.constant 0 : i32
    return %c0_i32, %c0_i32_0 : i32, i32
  }
  func.func @transform_8(%arg0: i32) -> (i32, i32) {
    %c0_i32 = arith.constant 0 : i32
    %c0_i32_0 = arith.constant 0 : i32
    %c0_i32_1 = arith.constant 0 : i32
    return %c0_i32, %c0_i32_0 : i32, i32
  }
  func.func @transform_9(%arg0: i32) -> (i32, i32) {
    %c0_i32 = arith.constant 0 : i32
    %c0_i32_0 = arith.constant 0 : i32
    %c0_i32_1 = arith.constant 0 : i32
    return %c0_i32, %c0_i32_0 : i32, i32
  }
  func.func @transform_10(%arg0: i32) -> (i32, i32) {
    %c0_i32 = arith.constant 0 : i32
    %c0_i32_0 = arith.constant 0 : i32
    %c0_i32_1 = arith.constant 0 : i32
    return %c0_i32, %c0_i32_0 : i32, i32
  }
  func.func @transform_11(%arg0: i32) -> (i32, i32) {
    %c0_i32 = arith.constant 0 : i32
    %c0_i32_0 = arith.constant 0 : i32
    return %arg0, %c0_i32 : i32, i32
  }
}

</mosaic_0001>

<bundles_post_ra>
// kernel: tpu_custom_call.1
= control target key start
LH: loop header
LB: loop body
LE: loop exit
PB: predicated region body
PF: predicated region fallthrough
CT: control target
= control target key end

     0   :  { %16 = vsyncpa [#allocation3], 0  ;;  %s2333_s0 = inlined_call_operand.hbm [shape: bf16[8,512], index: 0, kind: input, shape index: {}]   ;;  %s2334_s1 = inlined_call_operand.hbm [shape: bf16[512,256], index: 1, kind: input, shape index: {}]   ;;  %s2335_s2 = inlined_call_operand.vmem [shape: f32[1,256], index: 2, kind: input, shape index: {}]   ;;  %s2336_s3 = inlined_call_operand.hbm [shape: bf16[256,256], index: 3, kind: input, shape index: {}]   ;;  %s2337_s4 = inlined_call_operand.vmem [shape: f32[1,256], index: 4, kind: input, shape index: {}]   ;;  %s2338_s5 = inlined_call_operand.hbm [shape: bf16[256,256], index: 5, kind: input, shape index: {}]   ;;  %s2339_s6 = inlined_call_operand.vmem [shape: f32[1,256], index: 6, kind: input, shape index: {}]   ;;  %s2340_s7 = inlined_call_operand.hbm [shape: bf16[256,256], index: 7, kind: input, shape index: {}]   ;;  %s2341_s8 = inlined_call_operand.vmem [shape: f32[1,256], index: 8, kind: input, shape index: {}]   ;;  %s2342_s9 = inlined_call_operand.hbm [shape: bf16[256,128], index: 9, kind: input, shape index: {}]   ;;  %s2343_s10 = inlined_call_operand.vmem [shape: f32[1,128], index: 10, kind: input, shape index: {}]   ;;  %s2344_s11 = inlined_call_operand.hbm [shape: f32[8,128], index: 11, kind: output, shape index: {}]  }
   0x1   :  { %17 = vsyncpa [#allocation6], 0 }
   0x2   :  { %18 = vsyncpa [#allocation9], 0 }
   0x3   :  { %19 = vsyncpa [#allocation12], 0 }
   0x4   :  { %20 = vsyncpa [#allocation4], 0  ;;  %s2202_s17 = smov [#allocation5]  }
   0x5   :  { %s36_s18 = sshll.u32 %s2202_s17, 4  ;;  %s37_s18 = int_to_ptr.vmem [resolvable:$true] %s36_s18 }
   0x6   :  { %s2060_s19 = scalar_lea.vmem %s37_s18, 8192  ;;  %p2065_p1 = scmp.lt.s32.totalorder %s37_s18, %s37_s18 }
   0x7   :  { %p2061_p0 = scmp.ne.s32.totalorder %s37_s18, %s2060_s19  ;;  %p2066_p2 = scmp.lt.s32.totalorder %s2060_s19, %s2060_s19 }
   0x9   :  { %p2067_p3 = por %p2066_p2, %p2065_p1 }
   0xb   :  { %p2068_p4 = pnand %p2067_p3, %p2061_p0 }
   0xd   :  { %2071 = shalt.err (!%p2068_p4)
}
   0xe   :  { %s2203_s20 = smov 128   ;;  %s2204_s21 = smov 8  }
   0xf   :  { %42 = dma.hbm_to_vmem [thread:$0]  %s2334_s1, 8192, %s37_s18, [#allocation6], %s2203_s20, %s2203_s20, %s2204_s21  }
  0x10   :  { %s2205_s24 = smov [#allocation8]   ;;  %s2206_s26 = smov [#allocation2]  }
  0x11   :  { %s64_s25 = sshll.u32 %s2205_s24, 4  ;;  %s27_s27 = sshll.u32 %s2206_s26, 4  ;;  %s65_s25 = int_to_ptr.vmem [resolvable:$true] %s64_s25  ;;  %s28_s27 = int_to_ptr.vmem [resolvable:$true] %s27_s27 }
  0x12   :  { %s2080_s28 = scalar_lea.vmem %s65_s25, 4096  ;;  %p2085_p6 = scmp.lt.s32.totalorder %s65_s25, %s65_s25 }
  0x13   :  { %p2081_p5 = scmp.ne.s32.totalorder %s65_s25, %s2080_s28  ;;  %p2086_p7 = scmp.lt.s32.totalorder %s2080_s28, %s2080_s28 }
  0x15   :  { %p2087_p8 = por %p2086_p7, %p2085_p6 }
  0x17   :  { %p2088_p9 = pnand %p2087_p8, %p2081_p5 }
  0x19   :  { %2091 = shalt.err (!%p2088_p9)
}
  0x1a   :  { %70 = dma.hbm_to_vmem [thread:$0]  %s2338_s5, 4096, %s65_s25, [#allocation9], %s2203_s20, %s2203_s20, %s2204_s21  }
  0x1b   :  { %s2100_s1 = scalar_lea.vmem %s28_s27, 256  ;;  %p2105_p11 = scmp.lt.s32.totalorder %s28_s27, %s28_s27 }
  0x1c   :  { %p2101_p10 = scmp.ne.s32.totalorder %s28_s27, %s2100_s1  ;;  %p2106_p12 = scmp.lt.s32.totalorder %s2100_s1, %s2100_s1 }
  0x1e   :  { %p2107_p13 = por %p2106_p12, %p2105_p11 }
  0x20   :  { %p2108_p0 = pnand %p2107_p13, %p2101_p10 }
  0x22   :  { %2111 = shalt.err (!%p2108_p0)
}
  0x23   :  { %30 = dma.hbm_to_vmem [thread:$0]  %s2333_s0, 256, %s28_s27, [#allocation3]  }
  0x24   :  { %s2207_s14 = smov [#allocation7]   ;;  %s2208_s16 = smov [#allocation10]  }
  0x25   :  { %s50_s15 = sshll.u32 %s2207_s14, 4  ;;  %s78_s17 = sshll.u32 %s2208_s16, 4  ;;  %s51_s15 = int_to_ptr.vmem [resolvable:$true] %s50_s15  ;;  %s79_s17 = int_to_ptr.vmem [resolvable:$true] %s78_s17 }
  0x26   :  { %s2120_s18 = scalar_lea.vmem %s51_s15, 4096  ;;  %p2125_p2 = scmp.lt.s32.totalorder %s51_s15, %s51_s15 }
  0x27   :  { %p2121_p1 = scmp.ne.s32.totalorder %s51_s15, %s2120_s18  ;;  %p2126_p3 = scmp.lt.s32.totalorder %s2120_s18, %s2120_s18 }
  0x29   :  { %p2127_p4 = por %p2126_p3, %p2125_p2 }
  0x2b   :  { %p2128_p5 = pnand %p2127_p4, %p2121_p1 }
  0x2d   :  { %2131 = shalt.err (!%p2128_p5)
}
  0x2e   :  { %56 = dma.hbm_to_vmem [thread:$0]  %s2336_s3, 4096, %s51_s15, [#allocation6], %s2203_s20, %s2203_s20, %s2204_s21  }
  0x2f   :  { %s2140_s0 = scalar_lea.vmem %s79_s17, 4096  ;;  %p2145_p7 = scmp.lt.s32.totalorder %s79_s17, %s79_s17 }
  0x30   :  { %p2141_p6 = scmp.ne.s32.totalorder %s79_s17, %s2140_s0  ;;  %p2146_p8 = scmp.lt.s32.totalorder %s2140_s0, %s2140_s0 }
  0x32   :  { %p2147_p9 = por %p2146_p8, %p2145_p7 }
  0x34   :  { %p2148_p10 = pnand %p2147_p9, %p2141_p6 }
  0x36   :  { %2151 = shalt.err (!%p2148_p10)
}
  0x37   :  { %84 = dma.hbm_to_vmem [thread:$0]  %s2340_s7, 4096, %s79_s17, [#allocation9], %s2203_s20, %s2203_s20, %s2204_s21  }
  0x38   :  { %s2209_s24 = smov [#allocation11]  }
  0x39   :  { %s92_s25 = sshll.u32 %s2209_s24, 4  ;;  %s93_s25 = int_to_ptr.vmem [resolvable:$true] %s92_s25 }
  0x3a   :  { %s2160_s26 = scalar_lea.vmem %s93_s25, 2048  ;;  %p2165_p12 = scmp.lt.s32.totalorder %s93_s25, %s93_s25 }
  0x3b   :  { %p2161_p11 = scmp.ne.s32.totalorder %s93_s25, %s2160_s26  ;;  %p2166_p13 = scmp.lt.s32.totalorder %s2160_s26, %s2160_s26 }
  0x3d   :  { %p2167_p0 = por %p2166_p13, %p2165_p12 }
  0x3f   :  { %p2168_p1 = pnand %p2167_p0, %p2161_p11 }
  0x41   :  { %2171 = shalt.err (!%p2168_p1)
}
  0x42   :  { %s2210_s3 = smov 64   ;;  %s2211_s27 = smov 4  }
  0x43   :  { %98 = dma.hbm_to_vmem [thread:$0]  %s2342_s9, 2048, %s93_s25, [#allocation12], %s2210_s3, %s2210_s3, %s2211_s27  }
  0x44   :  { %2192 = dma.done.wait [#allocation3], 256  }
  0x45   :  { %2193 = vsyncadd [#allocation3], 4294967040 }
  0x46   :  { %2194 = dma.done.wait [#allocation6], 12288  }
  0x47   :  { %2195 = vsyncadd [#allocation6], 4294955008 }
  0x48   :  { %2196 = dma.done.wait [#allocation9], 8192  }
  0x49   :  { %2197 = vsyncadd [#allocation9], 4294959104 }
  0x4a   :  { %2198 = dma.done.wait [#allocation12], 2048  }
  0x4b   :  { %2199 = vsyncadd [#allocation12], 4294965248  ;;  %v1790_v0 = vld [vmem:[#allocation5 + $0x74] ss:$8 sps:$4 sm:$0xff]   ;;  %v1794_v2 = vld [vmem:[#allocation5 + $0x70] ss:$8 sps:$4 sm:$0xff]  }
  0x4c   :  { %v1792_v1 = vld [vmem:[#allocation5 + $0x174] ss:$8 sps:$4 sm:$0xff]   ;;  %532 = vmatprep.subr.bf16.mxu0 %v1790_v0  ;;  %v1795_v3 = vld [vmem:[#allocation5 + $0x170] ss:$8 sps:$4 sm:$0xff]   ;;  %v1796_v4 = vld [vmem:[#allocation5 + $0x64] ss:$8 sps:$4 sm:$0xff]  }
  0x4d   :  { %573 = vmatprep.subr.bf16.mxu1 %v1792_v1  ;;  %533 = vmatpush1.bf16.msra.mxu0 %v1794_v2  ;;  %v1798_v5 = vld [vmem:[#allocation5 + $0x164] ss:$8 sps:$4 sm:$0xff]   ;;  %v1800_v6 = vld [vmem:[#allocation5 + $0x60] ss:$8 sps:$4 sm:$0xff]   ;;  %v1802_v8 = vld [vmem:[#allocation5 + $0x54] ss:$8 sps:$4 sm:$0xff]  }
  0x4e   :  { %574 = vmatpush1.bf16.msra.mxu1 %v1795_v3  ;;  %534 = vmatprep.subr.bf16.mxu0 %v1796_v4  ;;  %v1801_v7 = vld [vmem:[#allocation5 + $0x160] ss:$8 sps:$4 sm:$0xff]   ;;  %v1804_v9 = vld [vmem:[#allocation5 + $0x154] ss:$8 sps:$4 sm:$0xff]   ;;  %v1806_v10 = vld [vmem:[#allocation5 + $0x50] ss:$8 sps:$4 sm:$0xff]  }
  0x4f   :  { %575 = vmatprep.subr.bf16.mxu1 %v1798_v5  ;;  %v1807_v11 = vld [vmem:[#allocation5 + $0x150] ss:$8 sps:$4 sm:$0xff]   ;;  %v1808_v12 = vld [vmem:[#allocation5 + $0x44] ss:$8 sps:$4 sm:$0xff]   ;;  %v1812_v14 = vld [vmem:[#allocation5 + $0x40] ss:$8 sps:$4 sm:$0xff]  }
  0x50   :  { %v1810_v13 = vld [vmem:[#allocation5 + $0x144] ss:$8 sps:$4 sm:$0xff]   ;;  %v1813_v15 = vld [vmem:[#allocation5 + $0x140] ss:$8 sps:$4 sm:$0xff]   ;;  %v1814_v16 = vld [vmem:[#allocation5 + $0x34] ss:$8 sps:$4 sm:$0xff]  }
  0x51   :  { %535 = vmatpush1.bf16.msra.mxu0 %v1800_v6  ;;  %v1816_v17 = vld [vmem:[#allocation5 + $0x134] ss:$8 sps:$4 sm:$0xff]   ;;  %v1818_v18 = vld [vmem:[#allocation5 + $0x30] ss:$8 sps:$4 sm:$0xff]   ;;  %v1820_v20 = vld [vmem:[#allocation5 + $0x24] ss:$8 sps:$4 sm:$0xff]  }
  0x52   :  { %576 = vmatpush1.bf16.msra.mxu1 %v1801_v7  ;;  %536 = vmatprep.subr.bf16.mxu0 %v1802_v8  ;;  %v1819_v19 = vld [vmem:[#allocation5 + $0x130] ss:$8 sps:$4 sm:$0xff]   ;;  %v1822_v21 = vld [vmem:[#allocation5 + $0x124] ss:$8 sps:$4 sm:$0xff]   ;;  %v1824_v22 = vld [vmem:[#allocation5 + $0x20] ss:$8 sps:$4 sm:$0xff]  }
  0x53   :  { %577 = vmatprep.subr.bf16.mxu1 %v1804_v9  ;;  %v1825_v23 = vld [vmem:[#allocation5 + $0x120] ss:$8 sps:$4 sm:$0xff]   ;;  %v1826_v24 = vld [vmem:[#allocation5 + $0x14] ss:$8 sps:$4 sm:$0xff]   ;;  %v1830_v26 = vld [vmem:[#allocation5 + $0x10] ss:$8 sps:$4 sm:$0xff]  }
  0x54   :  { %v1828_v25 = vld [vmem:[#allocation5 + $0x114] ss:$8 sps:$4 sm:$0xff]   ;;  %v1831_v27 = vld [vmem:[#allocation5 + $0x110] ss:$8 sps:$4 sm:$0xff]   ;;  %v1832_v28 = vld [vmem:[#allocation5 + $0x4] ss:$8 sps:$4 sm:$0xff]  }
  0x55   :  { %537 = vmatpush1.bf16.msra.mxu0 %v1806_v10  ;;  %v1834_v29 = vld [vmem:[#allocation5 + $0x104] ss:$8 sps:$4 sm:$0xff]   ;;  %v1836_v30 = vld [vmem:[#allocation5] ss:$8 sps:$4 sm:$0xff]   ;;  %v1838_v32 = vld [vmem:[#allocation5 + $0xf4] ss:$8 sps:$4 sm:$0xff]  }
  0x56   :  { %578 = vmatpush1.bf16.msra.mxu1 %v1807_v11  ;;  %538 = vmatprep.subr.bf16.mxu0 %v1808_v12  ;;  %v1837_v31 = vld [vmem:[#allocation5 + $0x100] ss:$8 sps:$4 sm:$0xff]   ;;  %v1840_v33 = vld [vmem:[#allocation5 + $0x1f4] ss:$8 sps:$4 sm:$0xff]   ;;  %v1842_v34 = vld [vmem:[#allocation5 + $0xf0] ss:$8 sps:$4 sm:$0xff]  }
  0x57   :  { %579 = vmatprep.subr.bf16.mxu1 %v1810_v13  ;;  %v1843_v35 = vld [vmem:[#allocation5 + $0x1f0] ss:$8 sps:$4 sm:$0xff]   ;;  %v1844_v36 = vld [vmem:[#allocation5 + $0xe4] ss:$8 sps:$4 sm:$0xff]   ;;  %v1848_v38 = vld [vmem:[#allocation5 + $0xe0] ss:$8 sps:$4 sm:$0xff]  }
  0x58   :  { %v1846_v37 = vld [vmem:[#allocation5 + $0x1e4] ss:$8 sps:$4 sm:$0xff]   ;;  %v1849_v39 = vld [vmem:[#allocation5 + $0x1e0] ss:$8 sps:$4 sm:$0xff]   ;;  %v1850_v40 = vld [vmem:[#allocation5 + $0xd4] ss:$8 sps:$4 sm:$0xff]  }
  0x59   :  { %539 = vmatpush1.bf16.msra.mxu0 %v1812_v14  ;;  %v1852_v41 = vld [vmem:[#allocation5 + $0x1d4] ss:$8 sps:$4 sm:$0xff]   ;;  %v1854_v42 = vld [vmem:[#allocation5 + $0xd0] ss:$8 sps:$4 sm:$0xff]   ;;  %v1856_v44 = vld [vmem:[#allocation5 + $0xc4] ss:$8 sps:$4 sm:$0xff]  }
  0x5a   :  { %580 = vmatpush1.bf16.msra.mxu1 %v1813_v15  ;;  %540 = vmatprep.subr.bf16.mxu0 %v1814_v16  ;;  %v1855_v43 = vld [vmem:[#allocation5 + $0x1d0] ss:$8 sps:$4 sm:$0xff]   ;;  %v1858_v45 = vld [vmem:[#allocation5 + $0x1c4] ss:$8 sps:$4 sm:$0xff]   ;;  %v1860_v49 = vld [vmem:[#allocation5 + $0xc0] ss:$8 sps:$4 sm:$0xff]  }
  0x5b   :  { %581 = vmatprep.subr.bf16.mxu1 %v1816_v17  ;;  %v120_v46 = vld [vmem:[#allocation2] sm:$0xff]  ;;  %v121_v48 = vld [vmem:[#allocation2 + $0x8] sm:$0xff]  ;;  %v1861_v50 = vld [vmem:[#allocation5 + $0x1c0] ss:$8 sps:$4 sm:$0xff]   ;;  %s2212_s12 = smov [#allocation13]  }
  0x5c   :  { %v1577_v47 = vcombine.high %v120_v46, %v120_v46  ;;  %v1579_v51 = vcombine.high %v121_v48, %v121_v48  ;;  %v1862_v52 = vld [vmem:[#allocation5 + $0xb4] ss:$8 sps:$4 sm:$0xff]   ;;  %v1866_v54 = vld [vmem:[#allocation5 + $0xb0] ss:$8 sps:$4 sm:$0xff]   ;;  %v1868_v56 = vld [vmem:[#allocation5 + $0xa4] ss:$8 sps:$4 sm:$0xff]   ;;  %v1576_v6 = vcombine.low %v120_v46, %v120_v46  ;;  %v1578_v7 = vcombine.low %v121_v48, %v121_v48 }
  0x5d   :  { %541 = vmatpush1.bf16.msra.mxu0 %v1818_v18  ;;  %v1864_v53 = vld [vmem:[#allocation5 + $0x1b4] ss:$8 sps:$4 sm:$0xff]   ;;  %v1867_v55 = vld [vmem:[#allocation5 + $0x1b0] ss:$8 sps:$4 sm:$0xff]   ;;  %v1870_v57 = vld [vmem:[#allocation5 + $0x1a4] ss:$8 sps:$4 sm:$0xff]  }
  0x5e   :  { %582 = vmatpush1.bf16.msra.mxu1 %v1819_v19  ;;  %542 = vmatprep.subr.bf16.mxu0 %v1820_v20  ;;  %v1872_v58 = vld [vmem:[#allocation5 + $0xa0] ss:$8 sps:$4 sm:$0xff]   ;;  %v1874_v60 = vld [vmem:[#allocation5 + $0x94] ss:$8 sps:$4 sm:$0xff]   ;;  %v1878_v62 = vld [vmem:[#allocation5 + $0x90] ss:$8 sps:$4 sm:$0xff]  }
  0x5f   :  { %583 = vmatprep.subr.bf16.mxu1 %v1822_v21  ;;  %564 = vmatprep.mubr.bf16.mxu0 %v1577_v47  ;;  %v1873_v59 = vld [vmem:[#allocation5 + $0x1a0] ss:$8 sps:$4 sm:$0xff]   ;;  %v1876_v61 = vld [vmem:[#allocation5 + $0x194] ss:$8 sps:$4 sm:$0xff]   ;;  %v1879_v63 = vld [vmem:[#allocation5 + $0x190] ss:$8 sps:$4 sm:$0xff]  }
  0x60   :  { %605 = vmatprep.mubr.bf16.mxu1 %v1579_v51  ;;  %v1880_v0 = vld [vmem:[#allocation5 + $0x84] ss:$8 sps:$4 sm:$0xff]   ;;  %v1884_v2 = vld [vmem:[#allocation5 + $0x80] ss:$8 sps:$4 sm:$0xff]   ;;  %v1892_v4 = vld [vmem:[#allocation7 + $0x74] ss:$8 sps:$4 sm:$0xff]  }
  0x61   :  { %543 = vmatpush1.bf16.msra.mxu0 %v1824_v22  ;;  %v1882_v1 = vld [vmem:[#allocation5 + $0x184] ss:$8 sps:$4 sm:$0xff]   ;;  %v1885_v3 = vld [vmem:[#allocation5 + $0x180] ss:$8 sps:$4 sm:$0xff]   ;;  %v1890_v5 = vld [vmem:[#allocation7 + $0x70] ss:$8 sps:$4 sm:$0xff]  }
  0x62   :  { %584 = vmatpush1.bf16.msra.mxu1 %v1825_v23  ;;  %544 = vmatprep.subr.bf16.mxu0 %v1826_v24  ;;  %v1895_v8 = vld [vmem:[#allocation7 + $0x64] ss:$8 sps:$4 sm:$0xff]   ;;  %v1893_v9 = vld [vmem:[#allocation7 + $0x60] ss:$8 sps:$4 sm:$0xff]   ;;  %v1898_v10 = vld [vmem:[#allocation7 + $0x54] ss:$8 sps:$4 sm:$0xff]  }
  0x63   :  { %585 = vmatprep.subr.bf16.mxu1 %v1828_v25  ;;  %v1896_v11 = vld [vmem:[#allocation7 + $0x50] ss:$8 sps:$4 sm:$0xff]   ;;  %v1901_v12 = vld [vmem:[#allocation7 + $0x44] ss:$8 sps:$4 sm:$0xff]   ;;  %v1899_v13 = vld [vmem:[#allocation7 + $0x40] ss:$8 sps:$4 sm:$0xff]  }
  0x64   :  { %v1904_v14 = vld [vmem:[#allocation7 + $0x34] ss:$8 sps:$4 sm:$0xff]   ;;  %v1902_v15 = vld [vmem:[#allocation7 + $0x30] ss:$8 sps:$4 sm:$0xff]   ;;  %v1907_v16 = vld [vmem:[#allocation7 + $0x24] ss:$8 sps:$4 sm:$0xff]  }
  0x65   :  { %545 = vmatpush1.bf16.msra.mxu0 %v1830_v26  ;;  %v1905_v17 = vld [vmem:[#allocation7 + $0x20] ss:$8 sps:$4 sm:$0xff]   ;;  %v1910_v18 = vld [vmem:[#allocation7 + $0x14] ss:$8 sps:$4 sm:$0xff]   ;;  %v1908_v19 = vld [vmem:[#allocation7 + $0x10] ss:$8 sps:$4 sm:$0xff]  }
  0x66   :  { %586 = vmatpush1.bf16.msra.mxu1 %v1831_v27  ;;  %546 = vmatprep.subr.bf16.mxu0 %v1832_v28  ;;  %v1913_v20 = vld [vmem:[#allocation7 + $0x4] ss:$8 sps:$4 sm:$0xff]   ;;  %v1911_v21 = vld [vmem:[#allocation7] ss:$8 sps:$4 sm:$0xff]   ;;  %v1916_v22 = vld [vmem:[#allocation7 + $0xf4] ss:$8 sps:$4 sm:$0xff]  }
  0x67   :  { %587 = vmatprep.subr.bf16.mxu1 %v1834_v29  ;;  %v1914_v23 = vld [vmem:[#allocation7 + $0xf0] ss:$8 sps:$4 sm:$0xff]   ;;  %v1919_v24 = vld [vmem:[#allocation7 + $0xe4] ss:$8 sps:$4 sm:$0xff]   ;;  %v1917_v25 = vld [vmem:[#allocation7 + $0xe0] ss:$8 sps:$4 sm:$0xff]  }
  0x68   :  { %v1922_v26 = vld [vmem:[#allocation7 + $0xd4] ss:$8 sps:$4 sm:$0xff]   ;;  %v1920_v27 = vld [vmem:[#allocation7 + $0xd0] ss:$8 sps:$4 sm:$0xff]   ;;  %v1925_v28 = vld [vmem:[#allocation7 + $0xc4] ss:$8 sps:$4 sm:$0xff]  }
  0x69   :  { %547 = vmatpush1.bf16.msra.mxu0 %v1836_v30  ;;  %v1923_v29 = vld [vmem:[#allocation7 + $0xc0] ss:$8 sps:$4 sm:$0xff]   ;;  %v1928_v30 = vld [vmem:[#allocation7 + $0xb4] ss:$8 sps:$4 sm:$0xff]   ;;  %v1950_v47 = vld [vmem:[#allocation8 + $0x30] ss:$8 sps:$4 sm:$0xff]  }
  0x6a   :  { %588 = vmatpush1.bf16.msra.mxu1 %v1837_v31  ;;  %548 = vmatprep.subr.bf16.mxu0 %v1838_v32  ;;  %v1926_v31 = vld [vmem:[#allocation7 + $0xb0] ss:$8 sps:$4 sm:$0xff]   ;;  %v1931_v32 = vld [vmem:[#allocation7 + $0xa4] ss:$8 sps:$4 sm:$0xff]   ;;  %v1952_v46 = vld [vmem:[#allocation8 + $0x34] ss:$8 sps:$4 sm:$0xff]  }
  0x6b   :  { %589 = vmatprep.subr.bf16.mxu1 %v1840_v33  ;;  %v1929_v33 = vld [vmem:[#allocation7 + $0xa0] ss:$8 sps:$4 sm:$0xff]   ;;  %v1955_v48 = vld [vmem:[#allocation8 + $0x24] ss:$8 sps:$4 sm:$0xff]   ;;  %v1956_v51 = vld [vmem:[#allocation8 + $0x10] ss:$8 sps:$4 sm:$0xff]  }
  0x6c   :  { %s1564_s13 = sshll.u32 %s2212_s12, 4  ;;  %s1565_s13 = int_to_ptr.vmem [resolvable:$true] %s1564_s13 }
  0x6d   :  { %549 = vmatpush2.bf16.msra.mxu0 %v1842_v34  ;;  %v1934_v34 = vld [vmem:[#allocation7 + $0x94] ss:$8 sps:$4 sm:$0xff]   ;;  %s2172_s14 = scalar_lea.vmem %s1565_s13, 128  ;;  %p2177_p3 = scmp.lt.s32.totalorder %s1565_s13, %s1565_s13 }
  0x6e   :  { %590 = vmatpush2.bf16.msra.mxu1 %v1843_v35  ;;  %550 = vmatprep.subr.bf16.mxu0 %v1844_v36  ;;  %v1932_v35 = vld [vmem:[#allocation7 + $0x90] ss:$8 sps:$4 sm:$0xff]   ;;  %v1937_v36 = vld [vmem:[#allocation7 + $0x84] ss:$8 sps:$4 sm:$0xff]   ;;  %p2173_p2 = scmp.ne.s32.totalorder %s1565_s13, %s2172_s14  ;;  %p2178_p4 = scmp.lt.s32.totalorder %s2172_s14, %s2172_s14 }
  0x6f   :  { %591 = vmatprep.subr.bf16.mxu1 %v1846_v37  ;;  %v1935_v37 = vld [vmem:[#allocation7 + $0x80] ss:$8 sps:$4 sm:$0xff]  }
  0x70   :  { %p2179_p5 = por %p2178_p4, %p2177_p3 }
  0x71   :  { %551 = vmatpush2.bf16.msra.mxu0 %v1848_v38  ;;  %v1938_v38 = vld [vmem:[#allocation8 + $0x70] ss:$8 sps:$4 sm:$0xff]  }
  0x72   :  { %592 = vmatpush2.bf16.msra.mxu1 %v1849_v39  ;;  %552 = vmatprep.subr.bf16.mxu0 %v1850_v40  ;;  %v1940_v39 = vld [vmem:[#allocation8 + $0x74] ss:$8 sps:$4 sm:$0xff]   ;;  %v1943_v40 = vld [vmem:[#allocation8 + $0x64] ss:$8 sps:$4 sm:$0xff]   ;;  %p2180_p6 = pnand %p2179_p5, %p2173_p2 }
  0x73   :  { %593 = vmatprep.subr.bf16.mxu1 %v1852_v41  ;;  %v1941_v41 = vld [vmem:[#allocation8 + $0x60] ss:$8 sps:$4 sm:$0xff]  }
  0x75   :  { %553 = vmatpush2.bf16.msra.mxu0 %v1854_v42  ;;  %v1946_v42 = vld [vmem:[#allocation8 + $0x54] ss:$8 sps:$4 sm:$0xff]  }
  0x76   :  { %594 = vmatpush2.bf16.msra.mxu1 %v1855_v43  ;;  %554 = vmatprep.subr.bf16.mxu0 %v1856_v44  ;;  %v1944_v43 = vld [vmem:[#allocation8 + $0x50] ss:$8 sps:$4 sm:$0xff]   ;;  %v1949_v44 = vld [vmem:[#allocation8 + $0x44] ss:$8 sps:$4 sm:$0xff]  }
  0x77   :  { %595 = vmatprep.subr.bf16.mxu1 %v1858_v45  ;;  %v1947_v45 = vld [vmem:[#allocation8 + $0x40] ss:$8 sps:$4 sm:$0xff]  }
  0x79   :  { %555 = vmatpush2.bf16.msra.mxu0 %v1860_v49  ;;  %v1953_v49 = vld [vmem:[#allocation8 + $0x20] ss:$8 sps:$4 sm:$0xff]  }
  0x7a   :  { %596 = vmatpush2.bf16.msra.mxu1 %v1861_v50  ;;  %556 = vmatprep.subr.bf16.mxu0 %v1862_v52  ;;  %v1958_v50 = vld [vmem:[#allocation8 + $0x14] ss:$8 sps:$4 sm:$0xff]   ;;  %v1961_v52 = vld [vmem:[#allocation8 + $0x4] ss:$8 sps:$4 sm:$0xff]  }
  0x7b   :  { %597 = vmatprep.subr.bf16.mxu1 %v1864_v53  ;;  %v1959_v53 = vld [vmem:[#allocation8] ss:$8 sps:$4 sm:$0xff]  }
  0x7d   :  { %557 = vmatpush2.bf16.msra.mxu0 %v1866_v54  ;;  %v1964_v54 = vld [vmem:[#allocation8 + $0xf4] ss:$8 sps:$4 sm:$0xff]  }
  0x7e   :  { %598 = vmatpush2.bf16.msra.mxu1 %v1867_v55  ;;  %558 = vmatprep.subr.bf16.mxu0 %v1868_v56  ;;  %v1962_v55 = vld [vmem:[#allocation8 + $0xf0] ss:$8 sps:$4 sm:$0xff]   ;;  %v1967_v56 = vld [vmem:[#allocation8 + $0xe4] ss:$8 sps:$4 sm:$0xff]  }
  0x7f   :  { %599 = vmatprep.subr.bf16.mxu1 %v1870_v57  ;;  %v1965_v57 = vld [vmem:[#allocation8 + $0xe0] ss:$8 sps:$4 sm:$0xff]  }
  0x81   :  { %559 = vmatpush2.bf16.msra.mxu0 %v1872_v58  ;;  %v1970_v58 = vld [vmem:[#allocation8 + $0xd4] ss:$8 sps:$4 sm:$0xff]  }
  0x82   :  { %600 = vmatpush2.bf16.msra.mxu1 %v1873_v59  ;;  %560 = vmatprep.subr.bf16.mxu0 %v1874_v60  ;;  %v1968_v59 = vld [vmem:[#allocation8 + $0xd0] ss:$8 sps:$4 sm:$0xff]   ;;  %v1973_v60 = vld [vmem:[#allocation8 + $0xc4] ss:$8 sps:$4 sm:$0xff]  }
  0x83   :  { %601 = vmatprep.subr.bf16.mxu1 %v1876_v61  ;;  %v1971_v61 = vld [vmem:[#allocation8 + $0xc0] ss:$8 sps:$4 sm:$0xff]  }
  0x85   :  { %561 = vmatpush2.bf16.msra.mxu0 %v1878_v62  ;;  %v1976_v62 = vld [vmem:[#allocation8 + $0xb4] ss:$8 sps:$4 sm:$0xff]  }
  0x86   :  { %602 = vmatpush2.bf16.msra.mxu1 %v1879_v63  ;;  %562 = vmatprep.subr.bf16.mxu0 %v1880_v0  ;;  %v1974_v63 = vld [vmem:[#allocation8 + $0xb0] ss:$8 sps:$4 sm:$0xff]   ;;  %v1979_v0 = vld [vmem:[#allocation8 + $0xa4] ss:$8 sps:$4 sm:$0xff]  }
  0x87   :  { %603 = vmatprep.subr.bf16.mxu1 %v1882_v1  ;;  %v1977_v1 = vld [vmem:[#allocation8 + $0xa0] ss:$8 sps:$4 sm:$0xff]  }
  0x89   :  { %563 = vmatpush2.bf16.msra.mxu0 %v1884_v2  ;;  %v188_v2 = vlaneseq }
  0x8a   :  { %604 = vmatpush2.bf16.msra.mxu1 %v1885_v3  ;;  %826 = vmatprep.subr.bf16.mxu0 %v1892_v4 }
  0x8b   :  { %1079 = vmatprep.subr.bf16.mxu1 %v1940_v39  ;;  %v189_v3 = vshrl.u32 %v188_v2, 7  ;;  %v2000_v39 = vld [vmem:[#allocation10 + $0x34] ss:$8 sps:$4 sm:$0xff]  }
  0x8c   :  { %565 = vmatmul.mubr.bf16.vlgmr.msra.gmra.mxu0 %v1576_v6 }
  0x8d   :  { %606 = vmatmul.mubr.bf16.vlgmr.msra.gmra.mxu1 %v1578_v7  ;;  %827 = vmatpush1.bf16.msra.mxu0 %v1890_v5  ;;  %v2303_v4 = vsub.s32 0, %v189_v3  ;;  %v186_v5 = vld [vmem:[%s2335_s2] sm:$0x3]  ;;  %v2308_v6 = vsub.s32 1, %v189_v3 }
  0x8e   :  { %828 = vmatprep.subr.bf16.mxu0 %v1895_v8  ;;  %1080 = vmatpush1.bf16.msra.mxu1 %v1938_v38  ;;  %v1995_v38 = vld [vmem:[#allocation10 + $0x40] ss:$8 sps:$4 sm:$0xff]  }
  0x8f   :  { %1081 = vmatprep.subr.bf16.mxu1 %v1943_v40  ;;  %v191_v7 = vrot.slane %v186_v5, %v2303_v4  ;;  %v195_v8 = vrot.slane %v186_v5, %v2308_v6  ;;  %v1998_v40 = vld [vmem:[#allocation10 + $0x30] ss:$8 sps:$4 sm:$0xff]  }
  0x91   :  { %829 = vmatpush1.bf16.msra.mxu0 %v1893_v9 }
  0x92   :  { %830 = vmatprep.subr.bf16.mxu0 %v1898_v10  ;;  %1082 = vmatpush1.bf16.msra.mxu1 %v1941_v41  ;;  %v2003_v41 = vld [vmem:[#allocation10 + $0x24] ss:$8 sps:$4 sm:$0xff]  }
  0x93   :  { %1083 = vmatprep.subr.bf16.mxu1 %v1946_v42  ;;  %v2001_v42 = vld [vmem:[#allocation10 + $0x20] ss:$8 sps:$4 sm:$0xff]  }
  0x95   :  { %831 = vmatpush1.bf16.msra.mxu0 %v1896_v11 }
  0x96   :  { %832 = vmatprep.subr.bf16.mxu0 %v1901_v12  ;;  %1084 = vmatpush1.bf16.msra.mxu1 %v1944_v43  ;;  %v2006_v43 = vld [vmem:[#allocation10 + $0x14] ss:$8 sps:$4 sm:$0xff]  }
  0x97   :  { %1085 = vmatprep.subr.bf16.mxu1 %v1949_v44  ;;  %v2004_v44 = vld [vmem:[#allocation10 + $0x10] ss:$8 sps:$4 sm:$0xff]  }
  0x99   :  { %833 = vmatpush1.bf16.msra.mxu0 %v1899_v13 }
  0x9a   :  { %834 = vmatprep.subr.bf16.mxu0 %v1904_v14  ;;  %1086 = vmatpush1.bf16.msra.mxu1 %v1947_v45  ;;  %v2009_v45 = vld [vmem:[#allocation10 + $0x4] ss:$8 sps:$4 sm:$0xff]  }
  0x9b   :  { %1087 = vmatprep.subr.bf16.mxu1 %v1952_v46  ;;  %v2007_v46 = vld [vmem:[#allocation10] ss:$8 sps:$4 sm:$0xff]  }
  0x9d   :  { %835 = vmatpush1.bf16.msra.mxu0 %v1902_v15 }
  0x9e   :  { %836 = vmatprep.subr.bf16.mxu0 %v1907_v16  ;;  %1088 = vmatpush1.bf16.msra.mxu1 %v1950_v47  ;;  %v2012_v47 = vld [vmem:[#allocation10 + $0xf4] ss:$8 sps:$4 sm:$0xff]  }
  0x9f   :  { %1089 = vmatprep.subr.bf16.mxu1 %v1955_v48  ;;  %v2010_v48 = vld [vmem:[#allocation10 + $0xf0] ss:$8 sps:$4 sm:$0xff]  }
  0xa1   :  { %837 = vmatpush1.bf16.msra.mxu0 %v1905_v17 }
  0xa2   :  { %838 = vmatprep.subr.bf16.mxu0 %v1910_v18  ;;  %1090 = vmatpush1.bf16.msra.mxu1 %v1953_v49  ;;  %v2015_v49 = vld [vmem:[#allocation10 + $0xe4] ss:$8 sps:$4 sm:$0xff]  }
  0xa3   :  { %1091 = vmatprep.subr.bf16.mxu1 %v1958_v50  ;;  %v2013_v50 = vld [vmem:[#allocation10 + $0xe0] ss:$8 sps:$4 sm:$0xff]  }
  0xa5   :  { %839 = vmatpush1.bf16.msra.mxu0 %v1908_v19 }
  0xa6   :  { %840 = vmatprep.subr.bf16.mxu0 %v1913_v20  ;;  %1092 = vmatpush1.bf16.msra.mxu1 %v1956_v51  ;;  %v2018_v51 = vld [vmem:[#allocation10 + $0xd4] ss:$8 sps:$4 sm:$0xff]  }
  0xa7   :  { %1093 = vmatprep.subr.bf16.mxu1 %v1961_v52  ;;  %v2016_v52 = vld [vmem:[#allocation10 + $0xd0] ss:$8 sps:$4 sm:$0xff]  }
  0xa9   :  { %841 = vmatpush1.bf16.msra.mxu0 %v1911_v21 }
  0xaa   :  { %842 = vmatprep.subr.bf16.mxu0 %v1916_v22  ;;  %1094 = vmatpush1.bf16.msra.mxu1 %v1959_v53  ;;  %v2021_v53 = vld [vmem:[#allocation10 + $0xc4] ss:$8 sps:$4 sm:$0xff]  }
  0xab   :  { %1095 = vmatprep.subr.bf16.mxu1 %v1964_v54  ;;  %v2019_v54 = vld [vmem:[#allocation10 + $0xc0] ss:$8 sps:$4 sm:$0xff]  }
  0xad   :  { %843 = vmatpush2.bf16.msra.mxu0 %v1914_v23 }
  0xae   :  { %844 = vmatprep.subr.bf16.mxu0 %v1919_v24  ;;  %1096 = vmatpush2.bf16.msra.mxu1 %v1962_v55  ;;  %v2024_v55 = vld [vmem:[#allocation10 + $0xb4] ss:$8 sps:$4 sm:$0xff]  }
  0xaf   :  { %1097 = vmatprep.subr.bf16.mxu1 %v1967_v56  ;;  %v2022_v56 = vld [vmem:[#allocation10 + $0xb0] ss:$8 sps:$4 sm:$0xff]  }
  0xb1   :  { %845 = vmatpush2.bf16.msra.mxu0 %v1917_v25 }
  0xb2   :  { %846 = vmatprep.subr.bf16.mxu0 %v1922_v26  ;;  %1098 = vmatpush2.bf16.msra.mxu1 %v1965_v57  ;;  %v2027_v57 = vld [vmem:[#allocation10 + $0xa4] ss:$8 sps:$4 sm:$0xff]  }
  0xb3   :  { %1099 = vmatprep.subr.bf16.mxu1 %v1970_v58  ;;  %v2025_v58 = vld [vmem:[#allocation10 + $0xa0] ss:$8 sps:$4 sm:$0xff]  }
  0xb5   :  { %847 = vmatpush2.bf16.msra.mxu0 %v1920_v27  ;;  %v1982_v27 = vld [vmem:[#allocation8 + $0x94] ss:$8 sps:$4 sm:$0xff]  }
  0xb6   :  { %848 = vmatprep.subr.bf16.mxu0 %v1925_v28  ;;  %1100 = vmatpush2.bf16.msra.mxu1 %v1968_v59  ;;  %v1980_v28 = vld [vmem:[#allocation8 + $0x90] ss:$8 sps:$4 sm:$0xff]  }
  0xb7   :  { %1101 = vmatprep.subr.bf16.mxu1 %v1973_v60  ;;  %v654_v59 = vld [vmem:[%s2337_s4] sm:$0x3] }
  0xb8   :  { %v659_v60 = vrot.slane %v654_v59, %v2303_v4 }
  0xb9   :  { %849 = vmatpush2.bf16.msra.mxu0 %v1923_v29  ;;  %v1985_v29 = vld [vmem:[#allocation8 + $0x84] ss:$8 sps:$4 sm:$0xff]  }
  0xba   :  { %850 = vmatprep.subr.bf16.mxu0 %v1928_v30  ;;  %1102 = vmatpush2.bf16.msra.mxu1 %v1971_v61  ;;  %v1983_v30 = vld [vmem:[#allocation8 + $0x80] ss:$8 sps:$4 sm:$0xff]   ;;  %v663_v61 = vrot.slane %v654_v59, %v2308_v6 }
  0xbb   :  { %1103 = vmatprep.subr.bf16.mxu1 %v1976_v62 }
  0xbd   :  { %851 = vmatpush2.bf16.msra.mxu0 %v1926_v31  ;;  %v1986_v31 = vld [vmem:[#allocation10 + $0x70] ss:$8 sps:$4 sm:$0xff]  }
  0xbe   :  { %852 = vmatprep.subr.bf16.mxu0 %v1931_v32  ;;  %1104 = vmatpush2.bf16.msra.mxu1 %v1974_v63  ;;  %v1988_v32 = vld [vmem:[#allocation10 + $0x74] ss:$8 sps:$4 sm:$0xff]  }
  0xbf   :  { %1105 = vmatprep.subr.bf16.mxu1 %v1979_v0 }
  0xc1   :  { %853 = vmatpush2.bf16.msra.mxu0 %v1929_v33  ;;  %v1991_v33 = vld [vmem:[#allocation10 + $0x64] ss:$8 sps:$4 sm:$0xff]  }
  0xc2   :  { %854 = vmatprep.subr.bf16.mxu0 %v1934_v34  ;;  %1106 = vmatpush2.bf16.msra.mxu1 %v1977_v1  ;;  %v1989_v34 = vld [vmem:[#allocation10 + $0x60] ss:$8 sps:$4 sm:$0xff]  }
  0xc3   :  { %1107 = vmatprep.subr.bf16.mxu1 %v1982_v27  ;;  %v907_v27 = vld [vmem:[%s2339_s6] sm:$0x3] }
  0xc5   :  { %855 = vmatpush2.bf16.msra.mxu0 %v1932_v35  ;;  %v1994_v35 = vld [vmem:[#allocation10 + $0x54] ss:$8 sps:$4 sm:$0xff]  }
  0xc6   :  { %856 = vmatprep.subr.bf16.mxu0 %v1937_v36  ;;  %1108 = vmatpush2.bf16.msra.mxu1 %v1980_v28  ;;  %v1992_v36 = vld [vmem:[#allocation10 + $0x50] ss:$8 sps:$4 sm:$0xff]   ;;  %v912_v28 = vrot.slane %v907_v27, %v2303_v4 }
  0xc7   :  { %1109 = vmatprep.subr.bf16.mxu1 %v1985_v29  ;;  %v916_v29 = vrot.slane %v907_v27, %v2308_v6 }
  0xc9   :  { %857 = vmatpush2.bf16.msra.mxu0 %v1935_v37  ;;  %v1997_v37 = vld [vmem:[#allocation10 + $0x44] ss:$8 sps:$4 sm:$0xff]  }
  0xca   :  { %1110 = vmatpush2.bf16.msra.mxu1 %v1983_v30  ;;  %1332 = vmatprep.subr.bf16.mxu0 %v1988_v32 }
 0x14c   :  { %v566_v9 = vpop.f32.mrf.mxu0 }
 0x14d   :  { %v607_v10 = vpop.f32.mrf.mxu1  ;;  %v567_v11 = vadd.f32 %v566_v9, %v191_v7 }
 0x14e   :  { %v568_v12 = vpop.f32.mrf.mxu0 }
 0x14f   :  { %v609_v13 = vpop.f32.mrf.mxu1  ;;  %v608_v14 = vadd.f32 %v607_v10, %v567_v11  ;;  %v569_v15 = vadd.f32 %v568_v12, %v195_v8  ;;  %v2030_v12 = vld [vmem:[#allocation10 + $0x94] ss:$8 sps:$4 sm:$0xff]  }
 0x150   :  { %v570_v16 = vpop.f32.mrf.mxu0 }
 0x151   :  { %v611_v17 = vpop.f32.mrf.mxu1  ;;  %vm614_vm0 = vcmp.gt.f32.partialorder %v608_v14, 0.0  ;;  %v616_v18 = vmul.f32 0.2, %v608_v14  ;;  %v610_v19 = vadd.f32 %v609_v13, %v569_v15  ;;  %v2028_v13 = vld [vmem:[#allocation10 + $0x90] ss:$8 sps:$4 sm:$0xff]  }
 0x152   :  { %v571_v20 = vpop.f32.mrf.mxu0  ;;  %v2031_v15 = vld [vmem:[#allocation10 + $0x80] ss:$8 sps:$4 sm:$0xff]   ;;  %v2034_v16 = vld [vmem:[#allocation11 + $0x78] sm:$0xff]  }
 0x153   :  { %v612_v21 = vpop.f32.mrf.mxu1  ;;  %vm615_vm1 = vcmp.gt.f32.partialorder %v610_v19, 0.0  ;;  %v617_v22 = vmul.f32 0.2, %v610_v19  ;;  %v618_v23 = vsel %vm614_vm0, %v608_v14, %v616_v18  ;;  %v2033_v14 = vld [vmem:[#allocation10 + $0x84] ss:$8 sps:$4 sm:$0xff]   ;;  %v2035_v17 = vld [vmem:[#allocation11 + $0x38] sm:$0xff]   ;;  %1757 = vmatprep.subr.bf16.mxu1 %v2034_v16 }
 0x154   :  { %v620_v26 = vpack.c.bf16 %v618_v23, %v618_v23  ;;  %v2036_v18 = vld [vmem:[#allocation11 + $0x70] sm:$0xff]   ;;  %v2038_v20 = vld [vmem:[#allocation11 + $0x68] sm:$0xff]   ;;  %v2041_v23 = vld [vmem:[#allocation11 + $0x20] sm:$0xff]  }
 0x155   :  { %v619_v24 = vsel %vm615_vm1, %v610_v19, %v617_v22  ;;  %v2037_v19 = vld [vmem:[#allocation11 + $0x30] sm:$0xff]   ;;  %v2039_v21 = vld [vmem:[#allocation11 + $0x28] sm:$0xff]   ;;  %v2040_v22 = vld [vmem:[#allocation11 + $0x60] sm:$0xff]  }
 0x156   :  { %v621_v25 = vpack.c.bf16 %v619_v24, %v619_v24  ;;  %v2042_v24 = vld [vmem:[#allocation11 + $0x58] sm:$0xff]  }
 0x158   :  { %858 = vmatprep.mubr.bf16.mxu0 %v621_v25  ;;  %v2043_v25 = vld [vmem:[#allocation11 + $0x18] sm:$0xff]  }
 0x159   :  { %859 = vmatmul.mubr.bf16.vlgmr.msra.gmra.mxu0 %v620_v26  ;;  %v2044_v26 = vld [vmem:[#allocation11 + $0x50] sm:$0xff]  }
 0x15a   :  { %1333 = vmatpush1.bf16.msra.mxu0 %v1986_v31 }
 0x15b   :  { %1334 = vmatprep.subr.bf16.mxu0 %v1991_v33 }
 0x15e   :  { %1335 = vmatpush1.bf16.msra.mxu0 %v1989_v34 }
 0x15f   :  { %1336 = vmatprep.subr.bf16.mxu0 %v1994_v35 }
 0x162   :  { %1337 = vmatpush1.bf16.msra.mxu0 %v1992_v36 }
 0x163   :  { %1338 = vmatprep.subr.bf16.mxu0 %v1997_v37 }
 0x166   :  { %1339 = vmatpush1.bf16.msra.mxu0 %v1995_v38 }
 0x167   :  { %1340 = vmatprep.subr.bf16.mxu0 %v2000_v39 }
 0x16a   :  { %1341 = vmatpush1.bf16.msra.mxu0 %v1998_v40 }
 0x16b   :  { %1342 = vmatprep.subr.bf16.mxu0 %v2003_v41 }
 0x16e   :  { %1343 = vmatpush1.bf16.msra.mxu0 %v2001_v42  ;;  %v2045_v42 = vld [vmem:[#allocation11 + $0x10] sm:$0xff]  }
 0x16f   :  { %1344 = vmatprep.subr.bf16.mxu0 %v2006_v43  ;;  %v2046_v43 = vld [vmem:[#allocation11 + $0x48] sm:$0xff]  }
 0x172   :  { %1345 = vmatpush1.bf16.msra.mxu0 %v2004_v44  ;;  %v2047_v44 = vld [vmem:[#allocation11 + $0x8] sm:$0xff]  }
 0x173   :  { %1346 = vmatprep.subr.bf16.mxu0 %v2009_v45  ;;  %v2048_v45 = vld [vmem:[#allocation11 + $0x40] sm:$0xff]  }
 0x176   :  { %1347 = vmatpush1.bf16.msra.mxu0 %v2007_v46  ;;  %v2049_v46 = vld [vmem:[#allocation11] sm:$0xff]  }
 0x177   :  { %1348 = vmatprep.subr.bf16.mxu0 %v2012_v47  ;;  %v1160_v47 = vld [vmem:[%s2341_s8] sm:$0x3] }
 0x17a   :  { %1349 = vmatpush2.bf16.msra.mxu0 %v2010_v48  ;;  %v1165_v48 = vrot.slane %v1160_v47, %v2303_v4  ;;  %v1740_v4 = vld [vmem:[%s2343_s10] ss:$0 sm:$0xff] }
 0x17b   :  { %1350 = vmatprep.subr.bf16.mxu0 %v2015_v49  ;;  %v1169_v49 = vrot.slane %v1160_v47, %v2308_v6 }
 0x17e   :  { %1351 = vmatpush2.bf16.msra.mxu0 %v2013_v50 }
 0x17f   :  { %1352 = vmatprep.subr.bf16.mxu0 %v2018_v51 }
 0x182   :  { %1353 = vmatpush2.bf16.msra.mxu0 %v2016_v52 }
 0x183   :  { %1354 = vmatprep.subr.bf16.mxu0 %v2021_v53 }
 0x186   :  { %1355 = vmatpush2.bf16.msra.mxu0 %v2019_v54 }
 0x187   :  { %1356 = vmatprep.subr.bf16.mxu0 %v2024_v55 }
 0x18a   :  { %1357 = vmatpush2.bf16.msra.mxu0 %v2022_v56 }
 0x18b   :  { %1358 = vmatprep.subr.bf16.mxu0 %v2027_v57 }
 0x18e   :  { %1359 = vmatpush2.bf16.msra.mxu0 %v2025_v58 }
 0x18f   :  { %1360 = vmatprep.subr.bf16.mxu0 %v2030_v12 }
 0x192   :  { %1361 = vmatpush2.bf16.msra.mxu0 %v2028_v13 }
 0x193   :  { %1362 = vmatprep.subr.bf16.mxu0 %v2033_v14 }
 0x196   :  { %1363 = vmatpush2.bf16.msra.mxu0 %v2031_v15 }
 0x219   :  { %v860_v62 = vpop.f32.mrf.mxu0 }
 0x21a   :  { %v861_v63 = vadd.f32 %v860_v62, %v659_v60 }
 0x21b   :  { %v862_v0 = vpop.f32.mrf.mxu0 }
 0x21c   :  { %vm867_vm2 = vcmp.gt.f32.partialorder %v861_v63, 0.0  ;;  %v869_v1 = vmul.f32 0.2, %v861_v63  ;;  %v863_v2 = vadd.f32 %v862_v0, %v663_v61 }
 0x21d   :  { %v864_v3 = vpop.f32.mrf.mxu0 }
 0x21e   :  { %vm868_vm3 = vcmp.gt.f32.partialorder %v863_v2, 0.0  ;;  %v870_v5 = vmul.f32 0.2, %v863_v2  ;;  %v871_v7 = vsel %vm867_vm2, %v861_v63, %v869_v1 }
 0x21f   :  { %v865_v8 = vpop.f32.mrf.mxu0  ;;  %v873_v11 = vpack.c.bf16 %v871_v7, %v871_v7 }
 0x220   :  { %v872_v9 = vsel %vm868_vm3, %v863_v2, %v870_v5 }
 0x221   :  { %v874_v10 = vpack.c.bf16 %v872_v9, %v872_v9 }
 0x223   :  { %1111 = vmatprep.mubr.bf16.mxu1 %v874_v10 }
 0x224   :  { %1112 = vmatmul.mubr.bf16.vlgmr.msra.gmra.mxu1 %v873_v11 }
 0x225   :  { %1758 = vmatpush3.bf16.msra.mxu1 %v2035_v17 }
 0x226   :  { %1759 = vmatprep.subr.bf16.mxu1 %v2036_v18 }
 0x229   :  { %1760 = vmatpush3.bf16.msra.mxu1 %v2037_v19 }
 0x22a   :  { %1761 = vmatprep.subr.bf16.mxu1 %v2038_v20 }
 0x22d   :  { %1762 = vmatpush3.bf16.msra.mxu1 %v2039_v21 }
 0x22e   :  { %1763 = vmatprep.subr.bf16.mxu1 %v2040_v22 }
 0x231   :  { %1764 = vmatpush3.bf16.msra.mxu1 %v2041_v23 }
 0x232   :  { %1765 = vmatprep.subr.bf16.mxu1 %v2042_v24 }
 0x235   :  { %1766 = vmatpush3.bf16.msra.mxu1 %v2043_v25 }
 0x236   :  { %1767 = vmatprep.subr.bf16.mxu1 %v2044_v26 }
 0x239   :  { %1768 = vmatpush3.bf16.msra.mxu1 %v2045_v42 }
 0x23a   :  { %1769 = vmatprep.subr.bf16.mxu1 %v2046_v43 }
 0x23d   :  { %1770 = vmatpush3.bf16.msra.mxu1 %v2047_v44 }
 0x23e   :  { %1771 = vmatprep.subr.bf16.mxu1 %v2048_v45 }
 0x241   :  { %1772 = vmatpush3.bf16.msra.mxu1 %v2049_v46 }
 0x2e4   :  { %v1113_v30 = vpop.f32.mrf.mxu1 }
 0x2e5   :  { %v1114_v31 = vadd.f32 %v1113_v30, %v912_v28 }
 0x2e6   :  { %v1115_v32 = vpop.f32.mrf.mxu1 }
 0x2e7   :  { %vm1120_vm4 = vcmp.gt.f32.partialorder %v1114_v31, 0.0  ;;  %v1122_v33 = vmul.f32 0.2, %v1114_v31  ;;  %v1116_v34 = vadd.f32 %v1115_v32, %v916_v29 }
 0x2e8   :  { %v1117_v35 = vpop.f32.mrf.mxu1 }
 0x2e9   :  { %vm1121_vm5 = vcmp.gt.f32.partialorder %v1116_v34, 0.0  ;;  %v1123_v36 = vmul.f32 0.2, %v1116_v34  ;;  %v1124_v37 = vsel %vm1120_vm4, %v1114_v31, %v1122_v33 }
 0x2ea   :  { %v1118_v38 = vpop.f32.mrf.mxu1  ;;  %v1126_v41 = vpack.c.bf16 %v1124_v37, %v1124_v37 }
 0x2eb   :  { %v1125_v39 = vsel %vm1121_vm5, %v1116_v34, %v1123_v36 }
 0x2ec   :  { %v1127_v40 = vpack.c.bf16 %v1125_v39, %v1125_v39 }
 0x2ee   :  { %1364 = vmatprep.mubr.bf16.mxu0 %v1127_v40 }
 0x2ef   :  { %1365 = vmatmul.mubr.bf16.vlgmr.msra.gmra.mxu0 %v1126_v41 }
 0x3af   :  { %v1366_v50 = vpop.f32.mrf.mxu0 }
 0x3b0   :  { %v1367_v51 = vadd.f32 %v1366_v50, %v1165_v48 }
 0x3b1   :  { %v1368_v52 = vpop.f32.mrf.mxu0 }
 0x3b2   :  { %vm1373_vm6 = vcmp.gt.f32.partialorder %v1367_v51, 0.0  ;;  %v1375_v53 = vmul.f32 0.2, %v1367_v51  ;;  %v1369_v54 = vadd.f32 %v1368_v52, %v1169_v49 }
 0x3b3   :  { %v1370_v55 = vpop.f32.mrf.mxu0 }
 0x3b4   :  { %vm1374_vm7 = vcmp.gt.f32.partialorder %v1369_v54, 0.0  ;;  %v1376_v56 = vmul.f32 0.2, %v1369_v54  ;;  %v1377_v57 = vsel %vm1373_vm6, %v1367_v51, %v1375_v53 }
 0x3b5   :  { %v1371_v58 = vpop.f32.mrf.mxu0  ;;  %v1379_v61 = vpack.c.bf16 %v1377_v57, %v1377_v57 }
 0x3b6   :  { %v1378_v59 = vsel %vm1374_vm7, %v1369_v54, %v1376_v56 }
 0x3b7   :  { %v1380_v60 = vpack.c.bf16 %v1378_v59, %v1378_v59 }
 0x3b9   :  { %1548 = vmatprep.mubr.bf16.mxu1 %v1380_v60 }
 0x3ba   :  { %1549 = vmatmul.mubr.bf16.vlgmr.msra.gmra.mxu1 %v1379_v61 }
 0x47a   :  { %v1773_v62 = vpop.f32.mrf.mxu1 }
 0x47c   :  { %v1774_v6 = vpop.f32.mrf.mxu1 }
 0x47d   :  { %v1775_v63 = vadd.f32 %v1774_v6, %v1773_v62 }
 0x47e   :  { %v1776_v0 = vpop.f32.mrf.mxu1 }
 0x47f   :  { %v1551_v1 = vadd.f32 %v1775_v63, %v1740_v4 }
 0x480   :  { %v1777_v2 = vpop.f32.mrf.mxu1 }
 0x481   :  { %2050 = vtanh.f32 %v1551_v1 }
 0x48e   :  { %v2051_v3 = vpop.eup %2050 }
 0x48f   :  { %1557 = vst [vmem:[#allocation13] sm:$0xff] %v2051_v3 }
 0x490   :  { %2183 = shalt.err (!%p2180_p6)
}
 0x491   :  { %1567 = dma.vmem_to_hbm [thread:$0]  %s1565_s13, 128, %s2344_s11, [#allocation4]  }
 0x492   :  { %2200 = dma.done.wait [#allocation4], 128  }
 0x493   :  { %2201 = vsyncadd [#allocation4], 4294967168 }
 0x494   :  { %1571 = vsyncpa [#allocation3], 1 }
 0x495   :  { %1572 = vsyncpa [#allocation6], 1 }
 0x496   :  { %1573 = vsyncpa [#allocation9], 1 }
 0x497   :  { %1574 = vsyncpa [#allocation12], 1 }
 0x498   :  { %1575 = vsyncpa [#allocation4], 1 }

</bundles_post_ra>
